<compile_context>
chip_gen: v7x
topology: tpu7x:2x2x1
jax: 0.10.0
libtpu: 0.0.40
codegen_flags: <defaults>
</compile_context>

<pallas_src>
import numpy as np
import jax
import jax.numpy as jnp
from jax.experimental import pallas as pl
from jax.experimental.pallas import tpu as pltpu


# ---------------------------------------------------------------------------
# MADE mask construction (numpy glue, mirrors MADE.update_masks exactly,
# natural_ordering=True, num_masks=1)
# ---------------------------------------------------------------------------
def made_masks(nin, hidden_sizes, nout, seed=0, natural_ordering=True):
    L = len(hidden_sizes)
    rng = np.random.RandomState(seed)
    m = {}
    m[-1] = np.arange(nin) if natural_ordering else rng.permutation(nin)
    for l in range(L):
        m[l] = rng.randint(m[l - 1].min(), nin - 1, size=hidden_sizes[l])
    masks = [m[l - 1][:, None] <= m[l][None, :] for l in range(L)]
    masks.append(m[L - 1][:, None] < m[-1][None, :])
    if nout > nin:
        k = int(nout / nin)
        masks[-1] = np.concatenate([masks[-1]] * k, axis=1)
    # MaskedLinear stores mask.T so it aligns with weight (out, in)
    return [np.ascontiguousarray(mk.astype(np.float32).T) for mk in masks]


# ---------------------------------------------------------------------------
# Pallas kernel: MADE MLP (mask-folded, pre-transposed) + affine + log-det
# ---------------------------------------------------------------------------
def _maf_kernel(x_ref,
                w0_ref, w1_ref, w2_ref, w3s_ref, w3t_ref, b_ref,
                z_ref, logdet_ref):
    x = x_ref[...]                                   # (bt, D)
    D = z_ref.shape[1]

    # Packed biases: rows 0..2 are the hidden biases (width H),
    # rows 3 / 4 hold the s / t biases in their first D lanes.
    b0 = b_ref[0:1, :]
    b1 = b_ref[1:2, :]
    b2 = b_ref[2:3, :]
    b3s = b_ref[3:4, :D]
    b3t = b_ref[4:5, :D]

    h = jnp.dot(x, w0_ref[...], preferred_element_type=jnp.float32) + b0
    h = jnp.maximum(h, 0.0)
    h = jnp.dot(h, w1_ref[...], preferred_element_type=jnp.float32) + b1
    h = jnp.maximum(h, 0.0)
    h = jnp.dot(h, w2_ref[...], preferred_element_type=jnp.float32) + b2
    h = jnp.maximum(h, 0.0)

    s = jnp.dot(h, w3s_ref[...], preferred_element_type=jnp.float32) + b3s
    t = jnp.dot(h, w3t_ref[...], preferred_element_type=jnp.float32) + b3t

    z_ref[...] = x * jnp.exp(s) + t
    logdet_ref[...] = jnp.sum(s, axis=1, keepdims=True)


# ---------------------------------------------------------------------------
# Wrapper
# ---------------------------------------------------------------------------
def maf_forward(x, params, masks, parity, batch_tile=256):
    """x: (B, D) float32. params: list of (W(out,in), b(out,)). masks match W."""
    B, D = x.shape
    (w0, b0), (w1, b1), (w2, b2), (w3, b3) = params
    m0, m1, m2, m3 = masks

    # Fold static masks into weights and pre-transpose to (in, out).
    w0T = (m0 * w0).T                              # (D, H)
    w1T = (m1 * w1).T                              # (H, H)
    w2T = (m2 * w2).T                              # (H, H)
    w3_eff = m3 * w3                               # (2D, H)
    w3sT = w3_eff[:D, :].T                         # (H, D)
    w3tT = w3_eff[D:, :].T                         # (H, D)
    H = w0T.shape[1]

    # Pack all biases into one operand: rows [b0, b1, b2, b3s|0, b3t|0].
    b_all = jnp.zeros((5, H), jnp.float32)
    b_all = b_all.at[0].set(b0).at[1].set(b1).at[2].set(b2)
    b_all = b_all.at[3, :D].set(b3[:D]).at[4, :D].set(b3[D:])

    # Batch tiling: full array when small, 256-row blocks (pipelined) when big.
    bt = min(batch_tile, B)
    nb = pl.cdiv(B, bt)
    Bp = nb * bt
    if Bp != B:
        x_in = jnp.concatenate([x, jnp.zeros((Bp - B, D), x.dtype)], axis=0)
    else:
        x_in = x

    const_spec = lambda a: pl.BlockSpec(a.shape, lambda i: (0,) * a.ndim)

    z, logdet = pl.pallas_call(
        _maf_kernel,
        out_shape=(jax.ShapeDtypeStruct((Bp, D), jnp.float32),
                   jax.ShapeDtypeStruct((Bp, 1), jnp.float32)),
        grid=(nb,),
        in_specs=[
            pl.BlockSpec((bt, D), lambda i: (i, 0)),   # x: tiled over batch
            const_spec(w0T), const_spec(w1T), const_spec(w2T),
            const_spec(w3sT), const_spec(w3tT), const_spec(b_all),
        ],
        out_specs=(pl.BlockSpec((bt, D), lambda i: (i, 0)),
                   pl.BlockSpec((bt, 1), lambda i: (i, 0))),
        compiler_params=pltpu.CompilerParams(
            dimension_semantics=("parallel",)),
    )(x_in, w0T, w1T, w2T, w3sT, w3tT, b_all)

    z = z[:B]
    logdet = logdet[:B]
    if parity:
        z = jnp.flip(z, axis=1)   # static column reorder; kept in glue
    return z, logdet.reshape(B)


# ---------------------------------------------------------------------------
# Pure-JAX reference (for sanity check)
# ---------------------------------------------------------------------------
def maf_reference(x, params, masks, parity):
    h = x
    for i, ((w, b), m) in enumerate(zip(params, masks)):
        h = h @ (m * w).T + b
        if i < len(params) - 1:
            h = jnp.maximum(h, 0.0)
    D = x.shape[1]
    s, t = h[:, :D], h[:, D:]
    z = x * jnp.exp(s) + t
    if parity:
        z = jnp.flip(z, axis=1)
    return z, jnp.sum(s, axis=1)


if __name__ == "__main__":
    # Small shapes consistent with MAF(input_dim=8, parity=1, hidden_dim=64)
    B, D, H = 8, 8, 64
    parity = 1

    hs = [D] + [H, H, H] + [2 * D]
    key = jax.random.PRNGKey(0)
    params = []
    for h0, h1 in zip(hs, hs[1:]):
        key, kw, kb = jax.random.split(key, 3)
        bound = 1.0 / np.sqrt(h0)
        w = jax.random.uniform(kw, (h1, h0), jnp.float32, -bound, bound)
        b = jax.random.uniform(kb, (h1,), jnp.float32, -bound, bound)
        params.append((w, b))

    masks = [jnp.asarray(m) for m in made_masks(D, [H, H, H], 2 * D)]

    key, kx = jax.random.split(key)
    x = jax.random.normal(kx, (B, D), jnp.float32)

    z, log_det = maf_forward(x, params, masks, parity)
    jax.block_until_ready((z, log_det))

    z_ref, ld_ref = maf_reference(x, params, masks, parity)
    assert z.shape == (B, D) and log_det.shape == (B,)
    np.testing.assert_allclose(np.asarray(z), np.asarray(z_ref), rtol=1e-5, atol=1e-5)
    np.testing.assert_allclose(np.asarray(log_det), np.asarray(ld_ref), rtol=1e-5, atol=1e-5)

    print("KERNEL_OK")
</pallas_src>

<mosaic_0001>
module attributes {stable_mosaic.version = 11 : i64} {
  func.func @_maf_kernel(%arg0: i32, %arg1: memref<8x8xf32, #tpu.memory_space<vmem>>, %arg2: memref<8x64xf32, #tpu.memory_space<vmem>>, %arg3: memref<64x64xf32, #tpu.memory_space<vmem>>, %arg4: memref<64x64xf32, #tpu.memory_space<vmem>>, %arg5: memref<64x8xf32, #tpu.memory_space<vmem>>, %arg6: memref<64x8xf32, #tpu.memory_space<vmem>>, %arg7: memref<5x64xf32, #tpu.memory_space<vmem>>, %arg8: memref<8x8xf32, #tpu.memory_space<vmem>>, %arg9: memref<8x1xf32, #tpu.memory_space<vmem>>) attributes {dimension_semantics = [#tpu.dimension_semantics<parallel>], iteration_bounds = array<i64: 1>, scalar_prefetch = 0 : i64, scratch_operands = 0 : i64, tpu.core_type = #tpu.core_type<tc>, window_params = [{transform_indices = @transform_0, window_bounds = array<i64: 8, 8>}, {pipeline_mode = #tpu.pipeline_mode<synchronous>, transform_indices = @transform_1, window_bounds = array<i64: 8, 64>}, {pipeline_mode = #tpu.pipeline_mode<synchronous>, transform_indices = @transform_2, window_bounds = array<i64: 64, 64>}, {pipeline_mode = #tpu.pipeline_mode<synchronous>, transform_indices = @transform_3, window_bounds = array<i64: 64, 64>}, {pipeline_mode = #tpu.pipeline_mode<synchronous>, transform_indices = @transform_4, window_bounds = array<i64: 64, 8>}, {pipeline_mode = #tpu.pipeline_mode<synchronous>, transform_indices = @transform_5, window_bounds = array<i64: 64, 8>}, {pipeline_mode = #tpu.pipeline_mode<synchronous>, transform_indices = @transform_6, window_bounds = array<i64: 5, 64>}, {transform_indices = @transform_7, window_bounds = array<i64: 8, 8>}, {transform_indices = @transform_8, window_bounds = array<i64: 8, 1>}]} {
    %c0 = arith.constant 0 : index
    %c0_0 = arith.constant 0 : index
    %0 = vector.load %arg1[%c0, %c0_0] : memref<8x8xf32, #tpu.memory_space<vmem>>, vector<8x8xf32>
    %c0_1 = arith.constant 0 : index
    %c0_2 = arith.constant 0 : index
    %1 = vector.load %arg7[%c0_1, %c0_2] : memref<5x64xf32, #tpu.memory_space<vmem>>, vector<1x64xf32>
    %c1 = arith.constant 1 : index
    %c0_3 = arith.constant 0 : index
    %2 = vector.load %arg7[%c1, %c0_3] : memref<5x64xf32, #tpu.memory_space<vmem>>, vector<1x64xf32>
    %c2 = arith.constant 2 : index
    %c0_4 = arith.constant 0 : index
    %3 = vector.load %arg7[%c2, %c0_4] : memref<5x64xf32, #tpu.memory_space<vmem>>, vector<1x64xf32>
    %c3 = arith.constant 3 : index
    %c0_5 = arith.constant 0 : index
    %4 = vector.load %arg7[%c3, %c0_5] : memref<5x64xf32, #tpu.memory_space<vmem>>, vector<1x8xf32>
    %c4 = arith.constant 4 : index
    %c0_6 = arith.constant 0 : index
    %5 = vector.load %arg7[%c4, %c0_6] : memref<5x64xf32, #tpu.memory_space<vmem>>, vector<1x8xf32>
    %c0_7 = arith.constant 0 : index
    %c0_8 = arith.constant 0 : index
    %6 = vector.load %arg2[%c0_7, %c0_8] : memref<8x64xf32, #tpu.memory_space<vmem>>, vector<8x64xf32>
    %cst = arith.constant dense<0.000000e+00> : vector<8x64xf32>
    %7 = tpu.matmul %0, %6, %cst {dimension_numbers = #tpu.dot_dimension_numbers<[1], [0], [0], [1], [0, 0, 1, 1], [], []>} : vector<8x8xf32>, vector<8x64xf32>, vector<8x64xf32> -> vector<8x64xf32>
    %8 = vector.broadcast %1 : vector<1x64xf32> to vector<8x64xf32>
    %9 = arith.addf %7, %8 : vector<8x64xf32>
    %cst_9 = arith.constant 0.000000e+00 : f32
    %10 = vector.broadcast %cst_9 : f32 to vector<8x64xf32>
    %11 = arith.maximumf %9, %10 : vector<8x64xf32>
    %c0_10 = arith.constant 0 : index
    %c0_11 = arith.constant 0 : index
    %12 = vector.load %arg3[%c0_10, %c0_11] : memref<64x64xf32, #tpu.memory_space<vmem>>, vector<64x64xf32>
    %cst_12 = arith.constant dense<0.000000e+00> : vector<8x64xf32>
    %13 = tpu.matmul %11, %12, %cst_12 {dimension_numbers = #tpu.dot_dimension_numbers<[1], [0], [0], [1], [0, 0, 1, 1], [], []>} : vector<8x64xf32>, vector<64x64xf32>, vector<8x64xf32> -> vector<8x64xf32>
    %14 = vector.broadcast %2 : vector<1x64xf32> to vector<8x64xf32>
    %15 = arith.addf %13, %14 : vector<8x64xf32>
    %cst_13 = arith.constant 0.000000e+00 : f32
    %16 = vector.broadcast %cst_13 : f32 to vector<8x64xf32>
    %17 = arith.maximumf %15, %16 : vector<8x64xf32>
    %c0_14 = arith.constant 0 : index
    %c0_15 = arith.constant 0 : index
    %18 = vector.load %arg4[%c0_14, %c0_15] : memref<64x64xf32, #tpu.memory_space<vmem>>, vector<64x64xf32>
    %cst_16 = arith.constant dense<0.000000e+00> : vector<8x64xf32>
    %19 = tpu.matmul %17, %18, %cst_16 {dimension_numbers = #tpu.dot_dimension_numbers<[1], [0], [0], [1], [0, 0, 1, 1], [], []>} : vector<8x64xf32>, vector<64x64xf32>, vector<8x64xf32> -> vector<8x64xf32>
    %20 = vector.broadcast %3 : vector<1x64xf32> to vector<8x64xf32>
    %21 = arith.addf %19, %20 : vector<8x64xf32>
    %cst_17 = arith.constant 0.000000e+00 : f32
    %22 = vector.broadcast %cst_17 : f32 to vector<8x64xf32>
    %23 = arith.maximumf %21, %22 : vector<8x64xf32>
    %c0_18 = arith.constant 0 : index
    %c0_19 = arith.constant 0 : index
    %24 = vector.load %arg5[%c0_18, %c0_19] : memref<64x8xf32, #tpu.memory_space<vmem>>, vector<64x8xf32>
    %cst_20 = arith.constant dense<0.000000e+00> : vector<8x8xf32>
    %25 = tpu.matmul %23, %24, %cst_20 {dimension_numbers = #tpu.dot_dimension_numbers<[1], [0], [0], [1], [0, 0, 1, 1], [], []>} : vector<8x64xf32>, vector<64x8xf32>, vector<8x8xf32> -> vector<8x8xf32>
    %26 = vector.broadcast %4 : vector<1x8xf32> to vector<8x8xf32>
    %27 = arith.addf %25, %26 : vector<8x8xf32>
    %c0_21 = arith.constant 0 : index
    %c0_22 = arith.constant 0 : index
    %28 = vector.load %arg6[%c0_21, %c0_22] : memref<64x8xf32, #tpu.memory_space<vmem>>, vector<64x8xf32>
    %cst_23 = arith.constant dense<0.000000e+00> : vector<8x8xf32>
    %29 = tpu.matmul %23, %28, %cst_23 {dimension_numbers = #tpu.dot_dimension_numbers<[1], [0], [0], [1], [0, 0, 1, 1], [], []>} : vector<8x64xf32>, vector<64x8xf32>, vector<8x8xf32> -> vector<8x8xf32>
    %30 = vector.broadcast %5 : vector<1x8xf32> to vector<8x8xf32>
    %31 = arith.addf %29, %30 : vector<8x8xf32>
    %32 = math.exp %27 : vector<8x8xf32>
    %33 = arith.mulf %0, %32 : vector<8x8xf32>
    %34 = arith.addf %33, %31 : vector<8x8xf32>
    %c0_24 = arith.constant 0 : index
    %c0_25 = arith.constant 0 : index
    %35 = vector.load %arg8[%c0_24, %c0_25] : memref<8x8xf32, #tpu.memory_space<vmem>>, vector<8x8xf32>
    tpu.vector_store %arg8[%c0_24, %c0_25], %34 {strides = array<i32>} : memref<8x8xf32, #tpu.memory_space<vmem>>, vector<8x8xf32>,
    %cst_26 = arith.constant dense<0.000000e+00> : vector<8xf32>
    %36 = vector.multi_reduction <add>, %27, %cst_26 [1] : vector<8x8xf32> to vector<8xf32>
    %37 = vector.shape_cast %36 : vector<8xf32> to vector<8x1xf32>
    %c0_27 = arith.constant 0 : index
    %c0_28 = arith.constant 0 : index
    %38 = vector.load %arg9[%c0_27, %c0_28] : memref<8x1xf32, #tpu.memory_space<vmem>>, vector<8x1xf32>
    tpu.vector_store %arg9[%c0_27, %c0_28], %37 {strides = array<i32>} : memref<8x1xf32, #tpu.memory_space<vmem>>, vector<8x1xf32>,
    return
  }
  func.func @transform_0(%arg0: i32) -> (i32, i32) {
    %c0_i32 = arith.constant 0 : i32
    %c0_i32_0 = arith.constant 0 : i32
    return %arg0, %c0_i32 : i32, i32
  }
  func.func @transform_1(%arg0: i32) -> (i32, i32) {
    %c0_i32 = arith.constant 0 : i32
    %c0_i32_0 = arith.constant 0 : i32
    %c0_i32_1 = arith.constant 0 : i32
    return %c0_i32, %c0_i32_0 : i32, i32
  }
  func.func @transform_2(%arg0: i32) -> (i32, i32) {
    %c0_i32 = arith.constant 0 : i32
    %c0_i32_0 = arith.constant 0 : i32
    %c0_i32_1 = arith.constant 0 : i32
    return %c0_i32, %c0_i32_0 : i32, i32
  }
  func.func @transform_3(%arg0: i32) -> (i32, i32) {
    %c0_i32 = arith.constant 0 : i32
    %c0_i32_0 = arith.constant 0 : i32
    %c0_i32_1 = arith.constant 0 : i32
    return %c0_i32, %c0_i32_0 : i32, i32
  }
  func.func @transform_4(%arg0: i32) -> (i32, i32) {
    %c0_i32 = arith.constant 0 : i32
    %c0_i32_0 = arith.constant 0 : i32
    %c0_i32_1 = arith.constant 0 : i32
    return %c0_i32, %c0_i32_0 : i32, i32
  }
  func.func @transform_5(%arg0: i32) -> (i32, i32) {
    %c0_i32 = arith.constant 0 : i32
    %c0_i32_0 = arith.constant 0 : i32
    %c0_i32_1 = arith.constant 0 : i32
    return %c0_i32, %c0_i32_0 : i32, i32
  }
  func.func @transform_6(%arg0: i32) -> (i32, i32) {
    %c0_i32 = arith.constant 0 : i32
    %c0_i32_0 = arith.constant 0 : i32
    %c0_i32_1 = arith.constant 0 : i32
    return %c0_i32, %c0_i32_0 : i32, i32
  }
  func.func @transform_7(%arg0: i32) -> (i32, i32) {
    %c0_i32 = arith.constant 0 : i32
    %c0_i32_0 = arith.constant 0 : i32
    return %arg0, %c0_i32 : i32, i32
  }
  func.func @transform_8(%arg0: i32) -> (i32, i32) {
    %c0_i32 = arith.constant 0 : i32
    %c0_i32_0 = arith.constant 0 : i32
    return %arg0, %c0_i32 : i32, i32
  }
}

</mosaic_0001>

<bundles_post_ra>
// kernel: tpu_custom_call.1
= control target key start
LH: loop header
LB: loop body
LE: loop exit
PB: predicated region body
PF: predicated region fallthrough
CT: control target
= control target key end

     0   :  { %14 = vsyncpa [#allocation3], 0  ;;  %s957_s0 = inlined_call_operand.vmem [shape: f32[8,8], index: 0, kind: input, shape index: {}]   ;;  %s958_s1 = inlined_call_operand.hbm [shape: f32[8,64], index: 1, kind: input, shape index: {}]   ;;  %s959_s2 = inlined_call_operand.vmem [shape: f32[64,64], index: 2, kind: input, shape index: {}]   ;;  %s960_s3 = inlined_call_operand.vmem [shape: f32[64,64], index: 3, kind: input, shape index: {}]   ;;  %s961_s4 = inlined_call_operand.vmem [shape: f32[64,8], index: 4, kind: input, shape index: {}]   ;;  %s962_s5 = inlined_call_operand.vmem [shape: f32[64,8], index: 5, kind: input, shape index: {}]   ;;  %s963_s6 = inlined_call_operand.vmem [shape: f32[5,64], index: 6, kind: input, shape index: {}]   ;;  %s964_s7 = inlined_call_operand.hbm [shape: f32[8,8], index: 7, kind: output, shape index: {0}]   ;;  %s965_s8 = inlined_call_operand.vmem [shape: f32[8,1], index: 8, kind: output, shape index: {1}]  }
   0x1   :  { %15 = vsyncpa [#allocation4], 0  ;;  %s728_s27 = smov [#allocation2]   ;;  %s680_s9 = scalar_lea.hbm %s958_s1, 128 }
   0x2   :  { %s24_s28 = sshll.u32 %s728_s27, 4  ;;  %p681_p0 = scmp.ne.s32.totalorder %s958_s1, %s680_s9  ;;  %s25_s28 = int_to_ptr.vmem [resolvable:$true] %s24_s28 }
   0x3   :  { %p684_p1 = scmp.lt.u32.totalorder %s680_s9, %s958_s1 }
   0x5   :  { %p686_p2 = pnand %p684_p1, %p681_p0 }
   0x7   :  { %689 = shalt.err (!%p686_p2)
}
   0x8   :  { %s690_s14 = scalar_lea.vmem %s25_s28, 128  ;;  %p695_p4 = scmp.lt.s32.totalorder %s25_s28, %s25_s28 }
   0x9   :  { %p691_p3 = scmp.ne.s32.totalorder %s25_s28, %s690_s14  ;;  %p696_p5 = scmp.lt.s32.totalorder %s690_s14, %s690_s14 }
   0xb   :  { %p697_p6 = por %p696_p5, %p695_p4 }
   0xd   :  { %p698_p7 = pnand %p697_p6, %p691_p3 }
   0xf   :  { %701 = shalt.err (!%p698_p7)
}
  0x10   :  { %27 = dma.hbm_to_vmem [thread:$0]  %s958_s1, 128, %s25_s28, [#allocation3]  }
  0x11   :  { %724 = dma.done.wait [#allocation3], 128  }
  0x12   :  { %725 = vsyncadd [#allocation3], 4294967168  ;;  %v729_v0 = vmov 0.0   ;;  %vm730_vm0 = vmmov 0   ;;  %v731_v1 = vmov 0.0|0.0   ;;  %vm52_vm1 = vcmask 64512  }
  0x13   :  { %544 = vmatprep.subr.mxu0 %v729_v0  ;;  %546 = vmatprep.mubr.msk.f32.mxu0 %vm730_vm0, %v729_v0  ;;  %v47_v2 = vld [vmem:[#allocation2] sm:$0xff]  ;;  %v128_v5 = vld [vmem:[%s959_s2 + $0x8] sm:$0xff]  ;;  %v129_v6 = vld [vmem:[%s959_s2 + $0x10] sm:$0xff]  ;;  %vm139_vm2 = vcmask 523264   ;;  %s732_s15 = smov [#allocation5]  }
  0x14   :  { %625 = vmatprep.subr.bf16.mxu1 %v731_v1  ;;  %565 = vmatprep.mubr.msk.f32.mxu1 %vm730_vm0, %v729_v0  ;;  %v799_v3 = vld [vmem:[%s957_s0] sm:$0xff]  ;;  %v130_v7 = vld [vmem:[%s959_s2 + $0x18] sm:$0xff]  ;;  %v132_v11 = vld [vmem:[%s959_s2 + $0x28] sm:$0xff]  ;;  %s483_s16 = sshll.u32 %s732_s15, 4  ;;  %s484_s16 = int_to_ptr.vmem [resolvable:$true] %s483_s16 }
  0x15   :  { %v127_v4 = vld [vmem:[%s959_s2] sm:$0xff]  ;;  %545 = vmatpush3.msra.mxu0 %v47_v2  ;;  %v629_v9 = vpack.c.bf16 %v130_v7, %v129_v6  ;;  %v133_v13 = vld [vmem:[%s959_s2 + $0x30] sm:$0xff]  ;;  %v134_v14 = vld [vmem:[%s959_s2 + $0x38] sm:$0xff]  ;;  %s702_s17 = scalar_lea.vmem %s484_s16, 128  ;;  %p707_p9 = scmp.lt.s32.totalorder %s484_s16, %s484_s16 }
  0x16   :  { %547 = vmatmul.mubr.msk.f32.vlgmr.msra.gmra.mrb[0].mxu0 %vm52_vm1, %v799_v3  ;;  %v626_v8 = vpack.c.bf16 %v128_v5, %v127_v4  ;;  %637 = vmatprep.subr.bf16.mxu0 %v731_v1  ;;  %v131_v10 = vld [vmem:[%s959_s2 + $0x20] sm:$0xff]  ;;  %v635_v15 = vpack.c.bf16 %v134_v14, %v133_v13  ;;  %v215_v17 = vld [vmem:[%s960_s3 + $0x8] sm:$0xff]  ;;  %v216_v18 = vld [vmem:[%s960_s3 + $0x10] sm:$0xff]  ;;  %p703_p8 = scmp.ne.s32.totalorder %s484_s16, %s702_s17  ;;  %p708_p10 = scmp.lt.s32.totalorder %s702_s17, %s702_s17 }
  0x17   :  { %584 = vmatprep.mubr.msk.f32.mxu0 %vm730_vm0, %v729_v0  ;;  %v632_v12 = vpack.c.bf16 %v132_v11, %v131_v10  ;;  %v214_v16 = vld [vmem:[%s960_s3] sm:$0xff]  ;;  %v217_v20 = vld [vmem:[%s960_s3 + $0x18] sm:$0xff]  ;;  %v219_v23 = vld [vmem:[%s960_s3 + $0x28] sm:$0xff] }
  0x18   :  { %627 = vmatpush3.bf16.msra.mxu1 %v626_v8  ;;  %v638_v19 = vpack.c.bf16 %v215_v17, %v214_v16  ;;  %v641_v21 = vpack.c.bf16 %v217_v20, %v216_v18  ;;  %v218_v22 = vld [vmem:[%s960_s3 + $0x20] sm:$0xff]  ;;  %v220_v30 = vld [vmem:[%s960_s3 + $0x30] sm:$0xff]  ;;  %v221_v31 = vld [vmem:[%s960_s3 + $0x38] sm:$0xff]  ;;  %p709_p11 = por %p708_p10, %p707_p9 }
  0x19   :  { %628 = vmatprep.subr.bf16.mxu1 %v731_v1  ;;  %v644_v24 = vpack.c.bf16 %v219_v23, %v218_v22  ;;  %v496_v25 = vld [vmem:[%s963_s6] ss:$0 sm:$0xff]  ;;  %v647_v32 = vpack.c.bf16 %v221_v31, %v220_v30  ;;  %v301_v34 = vld [vmem:[%s961_s4 + $0x8] sm:$0xff]  ;;  %v302_v36 = vld [vmem:[%s961_s4 + $0x10] sm:$0xff] }
  0x1a   :  { %639 = vmatpush3.bf16.msra.mxu0 %v638_v19  ;;  %v300_v33 = vld [vmem:[%s961_s4] sm:$0xff]  ;;  %v303_v37 = vld [vmem:[%s961_s4 + $0x18] sm:$0xff]  ;;  %v305_v40 = vld [vmem:[%s961_s4 + $0x28] sm:$0xff]  ;;  %p710_p12 = pnand %p709_p11, %p703_p8 }
  0x1b   :  { %640 = vmatprep.subr.bf16.mxu0 %v731_v1  ;;  %v650_v35 = vpack.c.bf16 %v301_v34, %v300_v33  ;;  %v653_v38 = vpack.c.bf16 %v303_v37, %v302_v36  ;;  %v304_v39 = vld [vmem:[%s961_s4 + $0x20] sm:$0xff]  ;;  %v386_v44 = vld [vmem:[%s962_s5 + $0x8] sm:$0xff]  ;;  %v387_v50 = vld [vmem:[%s962_s5 + $0x10] sm:$0xff] }
  0x1c   :  { %630 = vmatpush3.bf16.msra.mxu1 %v629_v9  ;;  %v656_v41 = vpack.c.bf16 %v305_v40, %v304_v39  ;;  %v498_v42 = vld [vmem:[%s963_s6 + $0x1] ss:$0 sm:$0xff]  ;;  %v388_v51 = vld [vmem:[%s962_s5 + $0x18] sm:$0xff]  ;;  %v390_v54 = vld [vmem:[%s962_s5 + $0x28] sm:$0xff] }
  0x1d   :  { %631 = vmatprep.subr.bf16.mxu1 %v731_v1  ;;  %v385_v43 = vld [vmem:[%s962_s5] sm:$0xff]  ;;  %v665_v52 = vpack.c.bf16 %v388_v51, %v387_v50  ;;  %v306_v56 = vld [vmem:[%s961_s4 + $0x30] sm:$0xff]  ;;  %v307_v57 = vld [vmem:[%s961_s4 + $0x38] sm:$0xff] }
  0x1e   :  { %642 = vmatpush3.bf16.msra.mxu0 %v641_v21  ;;  %v662_v48 = vpack.c.bf16 %v386_v44, %v385_v43  ;;  %v389_v53 = vld [vmem:[%s962_s5 + $0x20] sm:$0xff]  ;;  %v391_v58 = vld [vmem:[%s962_s5 + $0x30] sm:$0xff]  ;;  %v659_v59 = vpack.c.bf16 %v307_v57, %v306_v56  ;;  %v392_v60 = vld [vmem:[%s962_s5 + $0x38] sm:$0xff] }
  0x1f   :  { %643 = vmatprep.subr.bf16.mxu0 %v731_v1  ;;  %v668_v55 = vpack.c.bf16 %v390_v54, %v389_v53  ;;  %v671_v61 = vpack.c.bf16 %v392_v60, %v391_v58  ;;  %v500_v62 = vld [vmem:[%s963_s6 + $0x2] ss:$0 sm:$0xff]  ;;  %v502_v4 = vld [vmem:[%s963_s6 + $0x3] ss:$0 sm:$0xff] }
  0x20   :  { %633 = vmatpush3.bf16.msra.mxu1 %v632_v12  ;;  %v504_v12 = vld [vmem:[%s963_s6 + $0x4] ss:$0 sm:$0xff] }
  0x21   :  { %634 = vmatprep.subr.bf16.mxu1 %v731_v1 }
  0x22   :  { %645 = vmatpush3.bf16.msra.mxu0 %v644_v24 }
  0x23   :  { %646 = vmatprep.subr.bf16.mxu0 %v731_v1 }
  0x24   :  { %636 = vmatpush3.bf16.msra.mxu1 %v635_v15 }
  0x25   :  { %649 = vmatprep.subr.bf16.mxu1 %v731_v1 }
  0x26   :  { %648 = vmatpush3.bf16.msra.mxu0 %v647_v32 }
  0x27   :  { %661 = vmatprep.subr.bf16.mxu0 %v731_v1 }
  0xe9   :  { %v122_v26 = vpop.f32.mrb[0].mxu0 }
  0xea   :  { %v123_v27 = vadd.f32 %v496_v25, %v122_v26  ;;  %v548_v28 = vpop.f32.mrb[1].mxu0 }
  0xec   :  { %v126_v29 = vmax.f32 %v123_v27, 0.0 }
  0xee   :  { %566 = vmatmul.mubr.msk.f32.vlgmr.msra.gmra.mrb[0].mxu1 %vm139_vm2, %v126_v29 }
  0xef   :  { %603 = vmatprep.mubr.msk.f32.mxu1 %vm730_vm0, %v729_v0  ;;  %651 = vmatpush3.bf16.msra.mxu1 %v650_v35 }
  0xf0   :  { %652 = vmatprep.subr.bf16.mxu1 %v731_v1 }
  0xf3   :  { %654 = vmatpush3.bf16.msra.mxu1 %v653_v38 }
  0xf4   :  { %655 = vmatprep.subr.bf16.mxu1 %v731_v1 }
  0xf7   :  { %657 = vmatpush3.bf16.msra.mxu1 %v656_v41 }
  0xf8   :  { %658 = vmatprep.subr.bf16.mxu1 %v731_v1 }
  0xfb   :  { %660 = vmatpush3.bf16.msra.mxu1 %v659_v59 }
 0x1c1   :  { %v209_v45 = vpop.f32.mrb[0].mxu1 }
 0x1c2   :  { %v210_v46 = vadd.f32 %v498_v42, %v209_v45  ;;  %v567_v47 = vpop.f32.mrb[1].mxu1 }
 0x1c4   :  { %v213_v49 = vmax.f32 %v210_v46, 0.0 }
 0x1c6   :  { %585 = vmatmul.mubr.msk.f32.vlgmr.msra.gmra.mrb[2].mxu0 %vm139_vm2, %v213_v49 }
 0x1c7   :  { %663 = vmatpush3.bf16.msra.mxu0 %v662_v48  ;;  %622 = vmatprep.mubr.msk.f32.mxu0 %vm730_vm0, %v729_v0 }
 0x1c8   :  { %664 = vmatprep.subr.bf16.mxu0 %v731_v1 }
 0x1cb   :  { %666 = vmatpush3.bf16.msra.mxu0 %v665_v52 }
 0x1cc   :  { %667 = vmatprep.subr.bf16.mxu0 %v731_v1 }
 0x1cf   :  { %669 = vmatpush3.bf16.msra.mxu0 %v668_v55 }
 0x1d0   :  { %670 = vmatprep.subr.bf16.mxu0 %v731_v1 }
 0x1d3   :  { %672 = vmatpush3.bf16.msra.mxu0 %v671_v61 }
 0x299   :  { %v295_v63 = vpop.f32.mrb[2].mxu0 }
 0x29a   :  { %v296_v0 = vadd.f32 %v500_v62, %v295_v63  ;;  %v586_v1 = vpop.f32.mrb[3].mxu0 }
 0x29c   :  { %v299_v2 = vmax.f32 %v296_v0, 0.0 }
 0x29e   :  { %604 = vmatmul.mubr.msk.f32.vlgmr.msra.gmra.mrb[2].mxu1 %vm139_vm2, %v299_v2  ;;  %623 = vmatmul.mubr.msk.f32.vlgmr.msra.gmra.mrb[4].mxu0 %vm139_vm2, %v299_v2 }
 0x371   :  { %v381_v5 = vpop.f32.mrb[2].mxu1  ;;  %v463_v6 = vpop.f32.mrb[4].mxu0 }
 0x372   :  { %v382_v7 = vadd.f32 %v502_v4, %v381_v5  ;;  %v605_v8 = vpop.f32.mrb[3].mxu1  ;;  %v624_v9 = vpop.f32.mrb[5].mxu0  ;;  %v464_v14 = vadd.f32 %v504_v12, %v463_v6 }
 0x374   :  { %v467_v10 = vmul.f32 1.442695, %v382_v7  ;;  %v472_v11 = vsel %vm52_vm1, %v382_v7, 0.0 }
 0x375   :  { %473 = vadd.xlane.f32.xlu0 %v472_v11 }
 0x376   :  { %678 = vpow2.f32 %v467_v10 }
 0x380   :  { %v679_v13 = vpop.eup %678 }
 0x381   :  { %v469_v15 = vmul.f32 %v679_v13, %v799_v3 }
 0x383   :  { %v470_v16 = vadd.f32 %v469_v15, %v464_v14 }
 0x385   :  { %471 = vst.msk [vmem:[#allocation5] sm:$0xff] %vm52_vm1, %v470_v16 }
 0x386   :  { %713 = shalt.err (!%p710_p12)
}
 0x387   :  { %s714_s6 = scalar_lea.hbm %s964_s7, 128 }
 0x388   :  { %p715_p13 = scmp.ne.s32.totalorder %s964_s7, %s714_s6  ;;  %p718_p0 = scmp.lt.u32.totalorder %s714_s6, %s964_s7 }
 0x38a   :  { %p720_p1 = pnand %p718_p0, %p715_p13 }
 0x38c   :  { %723 = shalt.err (!%p720_p1)
}
 0x38d   :  { %486 = dma.vmem_to_hbm [thread:$0]  %s484_s16, 128, %s964_s7, [#allocation4]   ;;  %vm475_vm3 = vcmask 7168  }
 0x402   :  { %v474_v3 = vpop.xlane.xlu0 %473 }
 0x403   :  { %476 = vst.msk [vmem:[%s965_s8] sm:$0xff] %vm475_vm3, %v474_v3 }
 0x404   :  { %726 = dma.done.wait [#allocation4], 128  }
 0x405   :  { %727 = vsyncadd [#allocation4], 4294967168 }
 0x406   :  { %494 = vsyncpa [#allocation3], 1 }
 0x407   :  { %495 = vsyncpa [#allocation4], 1 }

</bundles_post_ra>
